<compile_context>
chip_gen: v5e
topology: v5e:2x2
jax: 0.10.0
libtpu: 0.0.40
codegen_flags: <defaults>
</compile_context>

<pallas_src>
import functools

import numpy as np
import jax
import jax.numpy as jnp
from jax.experimental import pallas as pl
from jax.experimental.pallas import tpu as pltpu


def _temporal_kernel(x_ref, w_ref, misc_ref, out_ref, *, T, n, U):
    """One grid step == one entity type, all T time steps at once.

    x_ref   : (1, T*n, U)   type-sorted, padded node states; row r = t*n + pos
    w_ref   : (1, U, 4U)    packed [Wq | Wk | Wv | Wfc]
    misc_ref: (1, 3, K)     row0=gamma, row1=beta (first U lanes),
                            row2=additive key mask tiled over T (first T*n lanes)
    out_ref : (1, T*n, U)
    """
    x2 = x_ref[0]                                   # (T*n, U)
    w_all = w_ref[0]                                # (U, 4U)
    misc = misc_ref[0]                              # (3, K)
    gamma = misc[0:1, :U]                           # (1, U)
    beta = misc[1:2, :U]                            # (1, U)
    key_mask = misc[2:3, :T * n]                    # (1, T*n)  0 valid / -1e30 pad

    # One lane-dense MXU matmul projects q/k/v (the fc columns are free work).
    proj = jnp.dot(x2, w_all, preferred_element_type=jnp.float32)   # (T*n, 4U)
    q = proj[(T - 1) * n:, 0:U]                     # (n, U)  q from LAST time step
    k = proj[:, U:2 * U]                            # (T*n, U)
    v = proj[:, 2 * U:3 * U]                        # (T*n, U)
    w_fc = w_all[:, 3 * U:]                         # (U, U)

    # All scores in one matmul, contracting the unit axis (keys on 64 lanes).
    s = jnp.einsum('qd,kd->qk', q, k,
                   preferred_element_type=jnp.float32)              # (n, T*n)
    s = s + key_mask                                # mask padded key columns

    # Per-time-step softmax + aggregation (T static, unrolled; no reshapes).
    agg_parts = []
    for t in range(T):
        st = s[:, t * n:(t + 1) * n]                                # (n, n)
        st = st - jnp.max(st, axis=-1, keepdims=True)
        p = jnp.exp(st)
        attn = p / jnp.sum(p, axis=-1, keepdims=True)               # exact divide
        agg_parts.append(jnp.dot(attn, v[t * n:(t + 1) * n, :],
                                 preferred_element_type=jnp.float32))
    agg = jnp.concatenate(agg_parts, axis=0)        # (T*n, U)

    # TODO(synk): nn.Dropout omitted (eval-mode identity).
    # LayerNorm over the units axis (eps=1e-5, affine), stats in f32.
    mean = jnp.mean(agg, axis=-1, keepdims=True)
    var = jnp.mean((agg - mean) ** 2, axis=-1, keepdims=True)
    ln = (agg - mean) * jax.lax.rsqrt(var + 1e-5)
    ln = ln * gamma + beta

    # fc projection + activation (ReLU chosen as `self.activation`).
    h = jnp.dot(ln, w_fc, preferred_element_type=jnp.float32)
    h = jnp.maximum(h, 0.0)

    # Residual: + q broadcast over every time step (matches PyTorch broadcast).
    q_tiled = jnp.concatenate([q] * T, axis=0)      # (T*n, U)
    out_ref[0] = (h + q_tiled).astype(out_ref.dtype)


def temporal_attention_fused(x_slab, w_all, misc, *, T, n_pad, U):
    """x_slab: (E, T*n_pad, U); w_all: (E, U, 4U); misc: (E, 3, K)."""
    E, TN, _ = x_slab.shape
    K = misc.shape[-1]
    kernel = functools.partial(_temporal_kernel, T=T, n=n_pad, U=U)
    return pl.pallas_call(
        kernel,
        out_shape=jax.ShapeDtypeStruct((E, TN, U), jnp.float32),
        grid_spec=pltpu.PrefetchScalarGridSpec(
            num_scalar_prefetch=0,
            grid=(E,),
            in_specs=[
                pl.BlockSpec((1, TN, U), lambda e: (e, 0, 0)),      # node states
                pl.BlockSpec((1, U, 4 * U), lambda e: (e, 0, 0)),   # packed weights
                pl.BlockSpec((1, 3, K), lambda e: (e, 0, 0)),       # gamma/beta/mask
            ],
            out_specs=pl.BlockSpec((1, TN, U), lambda e: (e, 0, 0)),
        ),
        compiler_params=pltpu.CompilerParams(
            dimension_semantics=("parallel",)),
    )(x_slab, w_all, misc)


class TemporalLayerPallas:
    """JAX/Pallas port of TemporalLayer (eval mode: dropout = identity)."""

    def __init__(self, entity_index, input_units, units, key):
        self.entity_indexs = entity_index
        self.num_entity = len(entity_index)
        self.input_units = input_units
        self.units = units

        # kaiming_normal_(nonlinearity='leaky_relu') on an (E, U, U) tensor:
        # fan_in = U*U, gain = sqrt(2 / (1 + slope^2)).
        gain = np.sqrt(2.0 / (1.0 + 0.01 ** 2))
        std = gain / float(units)
        k1, k2, k3, k4 = jax.random.split(key, 4)
        shp = (self.num_entity, units, units)
        self.q_w = std * jax.random.normal(k1, shp, jnp.float32)
        self.k_w = std * jax.random.normal(k2, shp, jnp.float32)
        self.v_w = std * jax.random.normal(k3, shp, jnp.float32)
        self.fc_w = std * jax.random.normal(k4, shp, jnp.float32)
        # Packed per-entity weight slab [Wq | Wk | Wv | Wfc]: (E, U, 4U).
        self.w_all = jnp.concatenate(
            [self.q_w, self.k_w, self.v_w, self.fc_w], axis=-1)
        # nn.LayerNorm default affine init (kept host-side for misc packing).
        self.ln_gamma = np.ones((units,), np.float32)
        self.ln_beta = np.zeros((units,), np.float32)

    def __call__(self, node_states, point_encs):
        """
        node_states: (T, N, U) float32
        point_encs : (N,) bool  -- True where node is an "account"
        returns    : (T, N, U)  (or (N, U) if T == 1, matching .squeeze(0))
        """
        T, N, U = node_states.shape
        E = self.num_entity
        account_mask = np.asarray(point_encs, dtype=bool)
        stock_mask = ~account_mask

        # Static (host-side) per-type node index sets (type 0 = account, 1 = stock).
        idx_per_type = [np.nonzero(stock_mask if e == 1 else account_mask)[0]
                        for e in range(E)]

        n_max = max(1, max(len(i) for i in idx_per_type))
        n_pad = int(-(-n_max // 8) * 8)            # sublane-align (multiple of 8)
        TN = T * n_pad
        K = max(U, TN)

        # Host-side static index plumbing: one gather in, one gather out.
        t_arr = np.arange(T, dtype=np.int64)
        in_idx = np.zeros((E, T, n_pad), np.int64)     # rows of node_states.reshape(T*N, U)
        misc = np.zeros((E, 3, K), np.float32)
        misc[:, 0, :U] = self.ln_gamma
        misc[:, 1, :U] = self.ln_beta
        pos_of = np.zeros((N,), np.int64)
        type_of = np.zeros((N,), np.int64)
        for e, idx in enumerate(idx_per_type):
            g = np.zeros((n_pad,), np.int64)
            g[:len(idx)] = idx                          # padded slots read node 0 (masked out)
            in_idx[e] = t_arr[:, None] * N + g[None, :]
            mrow = np.full((n_pad,), -1e30, np.float32)
            mrow[:len(idx)] = 0.0
            misc[e, 2, :TN] = np.tile(mrow, T)          # additive key mask, tiled over T
            pos_of[idx] = np.arange(len(idx))
            type_of[idx] = e
        # Inverse permutation: combined[t, j] <- out[type_of[j], t*n_pad + pos_of[j]]
        inv_idx = (type_of[None, :] * TN + t_arr[:, None] * n_pad
                   + pos_of[None, :]).reshape(-1)

        # Single gather into the padded, type-sorted (E, T*n_pad, U) slab.
        x_flat = node_states.astype(jnp.float32).reshape(T * N, U)
        x_slab = jnp.take(x_flat, jnp.asarray(in_idx.reshape(-1), jnp.int32),
                          axis=0).reshape(E, TN, U)

        out = temporal_attention_fused(x_slab, self.w_all, jnp.asarray(misc),
                                       T=T, n_pad=n_pad, U=U)

        # Single inverse-permutation gather back to node order (no transposes).
        combined = jnp.take(out.reshape(E * TN, U),
                            jnp.asarray(inv_idx, jnp.int32), axis=0)
        combined = combined.reshape(T, N, U)
        if T == 1:                                      # matches .squeeze(0)
            combined = combined[0]
        return combined


if __name__ == "__main__":
    key = jax.random.PRNGKey(0)
    k_layer, k_x = jax.random.split(key)

    T, N, U = 4, 16, 32
    layer = TemporalLayerPallas(entity_index=[0, 1], input_units=U, units=U,
                                key=k_layer)

    node_states = jax.random.normal(k_x, (T, N, U), jnp.float32)
    # first 10 nodes are "account", remaining 6 are "stock"
    point_encs = jnp.array([True] * 10 + [False] * 6)

    out = layer(node_states, point_encs)
    out = jax.block_until_ready(out)
    assert out.shape == (T, N, U) and out.dtype == jnp.float32
    assert bool(jnp.all(jnp.isfinite(out)))
    print("KERNEL_OK")
</pallas_src>

<mosaic_0001>
module attributes {stable_mosaic.version = 11 : i64} {
  func.func @_temporal_kernel(%arg0: i32, %arg1: memref<1x64x32xf32, #tpu.memory_space<vmem>>, %arg2: memref<1x32x128xf32, #tpu.memory_space<vmem>>, %arg3: memref<1x3x64xf32, #tpu.memory_space<vmem>>, %arg4: memref<1x64x32xf32, #tpu.memory_space<vmem>>) attributes {dimension_semantics = [#tpu.dimension_semantics<parallel>], iteration_bounds = array<i64: 2>, scalar_prefetch = 0 : i64, scratch_operands = 0 : i64, tpu.core_type = #tpu.core_type<tc>, window_params = [{transform_indices = @transform_0, window_bounds = array<i64: 1, 64, 32>}, {transform_indices = @transform_1, window_bounds = array<i64: 1, 32, 128>}, {transform_indices = @transform_2, window_bounds = array<i64: 1, 3, 64>}, {transform_indices = @transform_3, window_bounds = array<i64: 1, 64, 32>}]} {
    %c0 = arith.constant 0 : index
    %c0_0 = arith.constant 0 : index
    %c0_1 = arith.constant 0 : index
    %0 = vector.load %arg1[%c0, %c0_0, %c0_1] : memref<1x64x32xf32, #tpu.memory_space<vmem>>, vector<1x64x32xf32>
    %1 = vector.shape_cast %0 : vector<1x64x32xf32> to vector<64x32xf32>
    %c0_2 = arith.constant 0 : index
    %c0_3 = arith.constant 0 : index
    %c0_4 = arith.constant 0 : index
    %2 = vector.load %arg2[%c0_2, %c0_3, %c0_4] : memref<1x32x128xf32, #tpu.memory_space<vmem>>, vector<1x32x128xf32>
    %3 = vector.shape_cast %2 : vector<1x32x128xf32> to vector<32x128xf32>
    %c0_5 = arith.constant 0 : index
    %c0_6 = arith.constant 0 : index
    %c0_7 = arith.constant 0 : index
    %4 = vector.load %arg3[%c0_5, %c0_6, %c0_7] : memref<1x3x64xf32, #tpu.memory_space<vmem>>, vector<1x3x64xf32>
    %5 = vector.shape_cast %4 : vector<1x3x64xf32> to vector<3x64xf32>
    %6 = vector.extract_strided_slice %5 {offsets = [0, 0], sizes = [1, 32], strides = [1, 1]} : vector<3x64xf32> to vector<1x32xf32>
    %7 = vector.extract_strided_slice %5 {offsets = [1, 0], sizes = [1, 32], strides = [1, 1]} : vector<3x64xf32> to vector<1x32xf32>
    %8 = vector.extract_strided_slice %5 {offsets = [2, 0], sizes = [1, 64], strides = [1, 1]} : vector<3x64xf32> to vector<1x64xf32>
    %cst = arith.constant dense<0.000000e+00> : vector<64x128xf32>
    %9 = tpu.matmul %1, %3, %cst {dimension_numbers = #tpu.dot_dimension_numbers<[1], [0], [0], [1], [0, 0, 1, 1], [], []>} : vector<64x32xf32>, vector<32x128xf32>, vector<64x128xf32> -> vector<64x128xf32>
    %10 = vector.extract_strided_slice %9 {offsets = [48, 0], sizes = [16, 32], strides = [1, 1]} : vector<64x128xf32> to vector<16x32xf32>
    %11 = vector.extract_strided_slice %9 {offsets = [0, 32], sizes = [64, 32], strides = [1, 1]} : vector<64x128xf32> to vector<64x32xf32>
    %12 = vector.extract_strided_slice %9 {offsets = [0, 64], sizes = [64, 32], strides = [1, 1]} : vector<64x128xf32> to vector<64x32xf32>
    %13 = vector.extract_strided_slice %3 {offsets = [0, 96], sizes = [32, 32], strides = [1, 1]} : vector<32x128xf32> to vector<32x32xf32>
    "tpu.trace_start"() <{level = 10 : i32, message = "qd,kd->qk"}> : () -> ()
    %cst_8 = arith.constant dense<0.000000e+00> : vector<16x64xf32>
    %14 = tpu.matmul %10, %11, %cst_8 {dimension_numbers = #tpu.dot_dimension_numbers<[1], [1], [0], [0], [0, 0, 1, 0], [], []>} : vector<16x32xf32>, vector<64x32xf32>, vector<16x64xf32> -> vector<16x64xf32>
    "tpu.trace_stop"() : () -> ()
    %15 = vector.broadcast %8 : vector<1x64xf32> to vector<16x64xf32>
    %16 = arith.addf %14, %15 : vector<16x64xf32>
    %17 = vector.extract_strided_slice %16 {offsets = [0, 0], sizes = [16, 16], strides = [1, 1]} : vector<16x64xf32> to vector<16x16xf32>
    %cst_9 = arith.constant dense<0xFF800000> : vector<16xf32>
    %18 = vector.multi_reduction <maximumf>, %17, %cst_9 [1] : vector<16x16xf32> to vector<16xf32>
    %19 = vector.shape_cast %18 : vector<16xf32> to vector<16x1xf32>
    %20 = vector.broadcast %19 : vector<16x1xf32> to vector<16x16xf32>
    %21 = arith.subf %17, %20 : vector<16x16xf32>
    %22 = math.exp %21 : vector<16x16xf32>
    %cst_10 = arith.constant dense<0.000000e+00> : vector<16xf32>
    %23 = vector.multi_reduction <add>, %22, %cst_10 [1] : vector<16x16xf32> to vector<16xf32>
    %24 = vector.shape_cast %23 : vector<16xf32> to vector<16x1xf32>
    %25 = vector.broadcast %24 : vector<16x1xf32> to vector<16x16xf32>
    %26 = arith.divf %22, %25 : vector<16x16xf32>
    %27 = vector.extract_strided_slice %12 {offsets = [0, 0], sizes = [16, 32], strides = [1, 1]} : vector<64x32xf32> to vector<16x32xf32>
    %cst_11 = arith.constant dense<0.000000e+00> : vector<16x32xf32>
    %28 = tpu.matmul %26, %27, %cst_11 {dimension_numbers = #tpu.dot_dimension_numbers<[1], [0], [0], [1], [0, 0, 1, 1], [], []>} : vector<16x16xf32>, vector<16x32xf32>, vector<16x32xf32> -> vector<16x32xf32>
    %29 = vector.extract_strided_slice %16 {offsets = [0, 16], sizes = [16, 16], strides = [1, 1]} : vector<16x64xf32> to vector<16x16xf32>
    %cst_12 = arith.constant dense<0xFF800000> : vector<16xf32>
    %30 = vector.multi_reduction <maximumf>, %29, %cst_12 [1] : vector<16x16xf32> to vector<16xf32>
    %31 = vector.shape_cast %30 : vector<16xf32> to vector<16x1xf32>
    %32 = vector.broadcast %31 : vector<16x1xf32> to vector<16x16xf32>
    %33 = arith.subf %29, %32 : vector<16x16xf32>
    %34 = math.exp %33 : vector<16x16xf32>
    %cst_13 = arith.constant dense<0.000000e+00> : vector<16xf32>
    %35 = vector.multi_reduction <add>, %34, %cst_13 [1] : vector<16x16xf32> to vector<16xf32>
    %36 = vector.shape_cast %35 : vector<16xf32> to vector<16x1xf32>
    %37 = vector.broadcast %36 : vector<16x1xf32> to vector<16x16xf32>
    %38 = arith.divf %34, %37 : vector<16x16xf32>
    %39 = vector.extract_strided_slice %12 {offsets = [16, 0], sizes = [16, 32], strides = [1, 1]} : vector<64x32xf32> to vector<16x32xf32>
    %cst_14 = arith.constant dense<0.000000e+00> : vector<16x32xf32>
    %40 = tpu.matmul %38, %39, %cst_14 {dimension_numbers = #tpu.dot_dimension_numbers<[1], [0], [0], [1], [0, 0, 1, 1], [], []>} : vector<16x16xf32>, vector<16x32xf32>, vector<16x32xf32> -> vector<16x32xf32>
    %41 = vector.extract_strided_slice %16 {offsets = [0, 32], sizes = [16, 16], strides = [1, 1]} : vector<16x64xf32> to vector<16x16xf32>
    %cst_15 = arith.constant dense<0xFF800000> : vector<16xf32>
    %42 = vector.multi_reduction <maximumf>, %41, %cst_15 [1] : vector<16x16xf32> to vector<16xf32>
    %43 = vector.shape_cast %42 : vector<16xf32> to vector<16x1xf32>
    %44 = vector.broadcast %43 : vector<16x1xf32> to vector<16x16xf32>
    %45 = arith.subf %41, %44 : vector<16x16xf32>
    %46 = math.exp %45 : vector<16x16xf32>
    %cst_16 = arith.constant dense<0.000000e+00> : vector<16xf32>
    %47 = vector.multi_reduction <add>, %46, %cst_16 [1] : vector<16x16xf32> to vector<16xf32>
    %48 = vector.shape_cast %47 : vector<16xf32> to vector<16x1xf32>
    %49 = vector.broadcast %48 : vector<16x1xf32> to vector<16x16xf32>
    %50 = arith.divf %46, %49 : vector<16x16xf32>
    %51 = vector.extract_strided_slice %12 {offsets = [32, 0], sizes = [16, 32], strides = [1, 1]} : vector<64x32xf32> to vector<16x32xf32>
    %cst_17 = arith.constant dense<0.000000e+00> : vector<16x32xf32>
    %52 = tpu.matmul %50, %51, %cst_17 {dimension_numbers = #tpu.dot_dimension_numbers<[1], [0], [0], [1], [0, 0, 1, 1], [], []>} : vector<16x16xf32>, vector<16x32xf32>, vector<16x32xf32> -> vector<16x32xf32>
    %53 = vector.extract_strided_slice %16 {offsets = [0, 48], sizes = [16, 16], strides = [1, 1]} : vector<16x64xf32> to vector<16x16xf32>
    %cst_18 = arith.constant dense<0xFF800000> : vector<16xf32>
    %54 = vector.multi_reduction <maximumf>, %53, %cst_18 [1] : vector<16x16xf32> to vector<16xf32>
    %55 = vector.shape_cast %54 : vector<16xf32> to vector<16x1xf32>
    %56 = vector.broadcast %55 : vector<16x1xf32> to vector<16x16xf32>
    %57 = arith.subf %53, %56 : vector<16x16xf32>
    %58 = math.exp %57 : vector<16x16xf32>
    %cst_19 = arith.constant dense<0.000000e+00> : vector<16xf32>
    %59 = vector.multi_reduction <add>, %58, %cst_19 [1] : vector<16x16xf32> to vector<16xf32>
    %60 = vector.shape_cast %59 : vector<16xf32> to vector<16x1xf32>
    %61 = vector.broadcast %60 : vector<16x1xf32> to vector<16x16xf32>
    %62 = arith.divf %58, %61 : vector<16x16xf32>
    %63 = vector.extract_strided_slice %12 {offsets = [48, 0], sizes = [16, 32], strides = [1, 1]} : vector<64x32xf32> to vector<16x32xf32>
    %cst_20 = arith.constant dense<0.000000e+00> : vector<16x32xf32>
    %64 = tpu.matmul %62, %63, %cst_20 {dimension_numbers = #tpu.dot_dimension_numbers<[1], [0], [0], [1], [0, 0, 1, 1], [], []>} : vector<16x16xf32>, vector<16x32xf32>, vector<16x32xf32> -> vector<16x32xf32>
    %65 = tpu.concatenate %28, %40, %52, %64 in 0 : vector<16x32xf32>, vector<16x32xf32>, vector<16x32xf32>, vector<16x32xf32> -> vector<64x32xf32>
    %cst_21 = arith.constant dense<0.000000e+00> : vector<64xf32>
    %66 = vector.multi_reduction <add>, %65, %cst_21 [1] : vector<64x32xf32> to vector<64xf32>
    %67 = vector.shape_cast %66 : vector<64xf32> to vector<64x1xf32>
    %cst_22 = arith.constant 3.200000e+01 : f32
    %68 = vector.broadcast %cst_22 : f32 to vector<64x1xf32>
    %69 = arith.divf %67, %68 : vector<64x1xf32>
    %70 = vector.broadcast %69 : vector<64x1xf32> to vector<64x32xf32>
    %71 = arith.subf %65, %70 : vector<64x32xf32>
    %72 = arith.mulf %71, %71 : vector<64x32xf32>
    %cst_23 = arith.constant dense<0.000000e+00> : vector<64xf32>
    %73 = vector.multi_reduction <add>, %72, %cst_23 [1] : vector<64x32xf32> to vector<64xf32>
    %74 = vector.shape_cast %73 : vector<64xf32> to vector<64x1xf32>
    %cst_24 = arith.constant 3.200000e+01 : f32
    %75 = vector.broadcast %cst_24 : f32 to vector<64x1xf32>
    %76 = arith.divf %74, %75 : vector<64x1xf32>
    %77 = vector.broadcast %69 : vector<64x1xf32> to vector<64x32xf32>
    %78 = arith.subf %65, %77 : vector<64x32xf32>
    %cst_25 = arith.constant 9.99999974E-6 : f32
    %79 = vector.broadcast %cst_25 : f32 to vector<64x1xf32>
    %80 = arith.addf %76, %79 : vector<64x1xf32>
    %81 = math.rsqrt %80 : vector<64x1xf32>
    %82 = vector.broadcast %81 : vector<64x1xf32> to vector<64x32xf32>
    %83 = arith.mulf %78, %82 : vector<64x32xf32>
    %84 = vector.broadcast %6 : vector<1x32xf32> to vector<64x32xf32>
    %85 = arith.mulf %83, %84 : vector<64x32xf32>
    %86 = vector.broadcast %7 : vector<1x32xf32> to vector<64x32xf32>
    %87 = arith.addf %85, %86 : vector<64x32xf32>
    %cst_26 = arith.constant dense<0.000000e+00> : vector<64x32xf32>
    %88 = tpu.matmul %87, %13, %cst_26 {dimension_numbers = #tpu.dot_dimension_numbers<[1], [0], [0], [1], [0, 0, 1, 1], [], []>} : vector<64x32xf32>, vector<32x32xf32>, vector<64x32xf32> -> vector<64x32xf32>
    %cst_27 = arith.constant 0.000000e+00 : f32
    %89 = vector.broadcast %cst_27 : f32 to vector<64x32xf32>
    %90 = arith.maximumf %88, %89 : vector<64x32xf32>
    %91 = tpu.concatenate %10, %10, %10, %10 in 0 : vector<16x32xf32>, vector<16x32xf32>, vector<16x32xf32>, vector<16x32xf32> -> vector<64x32xf32>
    %92 = arith.addf %90, %91 : vector<64x32xf32>
    %c0_28 = arith.constant 0 : index
    %c0_29 = arith.constant 0 : index
    %c0_30 = arith.constant 0 : index
    %93 = vector.load %arg4[%c0_28, %c0_29, %c0_30] : memref<1x64x32xf32, #tpu.memory_space<vmem>>, vector<1x64x32xf32>
    %94 = vector.shape_cast %93 : vector<1x64x32xf32> to vector<64x32xf32>
    %95 = vector.shape_cast %92 : vector<64x32xf32> to vector<1x64x32xf32>
    tpu.vector_store %arg4[%c0_28, %c0_29, %c0_30], %95 {strides = array<i32>} : memref<1x64x32xf32, #tpu.memory_space<vmem>>, vector<1x64x32xf32>,
    return
  }
  func.func @transform_0(%arg0: i32) -> (i32, i32, i32) {
    %c0_i32 = arith.constant 0 : i32
    %c0_i32_0 = arith.constant 0 : i32
    %c0_i32_1 = arith.constant 0 : i32
    return %arg0, %c0_i32, %c0_i32_0 : i32, i32, i32
  }
  func.func @transform_1(%arg0: i32) -> (i32, i32, i32) {
    %c0_i32 = arith.constant 0 : i32
    %c0_i32_0 = arith.constant 0 : i32
    %c0_i32_1 = arith.constant 0 : i32
    return %arg0, %c0_i32, %c0_i32_0 : i32, i32, i32
  }
  func.func @transform_2(%arg0: i32) -> (i32, i32, i32) {
    %c0_i32 = arith.constant 0 : i32
    %c0_i32_0 = arith.constant 0 : i32
    %c0_i32_1 = arith.constant 0 : i32
    return %arg0, %c0_i32, %c0_i32_0 : i32, i32, i32
  }
  func.func @transform_3(%arg0: i32) -> (i32, i32, i32) {
    %c0_i32 = arith.constant 0 : i32
    %c0_i32_0 = arith.constant 0 : i32
    %c0_i32_1 = arith.constant 0 : i32
    return %arg0, %c0_i32, %c0_i32_0 : i32, i32, i32
  }
}

</mosaic_0001>

<bundles_post_ra>
// kernel: tpu_custom_call.1
= control target key start
LH: loop header
LB: loop body
LE: loop exit
PB: predicated region body
PF: predicated region fallthrough
CT: control target
= control target key end

     0   :  { %s1295_s12 = smov 0   ;;  %s1725_s0 = inlined_call_operand.vmem [shape: f32[2,64,32], index: 0, kind: input, shape index: {}]   ;;  %s1726_s1 = inlined_call_operand.vmem [shape: f32[2,32,128], index: 1, kind: input, shape index: {}]   ;;  %s1727_s2 = inlined_call_operand.vmem [shape: f32[2,3,64], index: 2, kind: input, shape index: {}]   ;;  %s1728_s3 = inlined_call_operand.vmem [shape: f32[2,64,32], index: 3, kind: output, shape index: {}]  }
   0x1 LB: > { %s1112_s13 = sadd.s32 4294967295, %s1267_s12   ;;  %p1116_p0 = scmp.ge.s32.totalorder %s1267_s12, 1  ;;  %s1267_s12 = sphi %s1295_s12, %s13_s12  }
   0x2   : > { %p156_p1 = scmp.lt.s32.totalorder %s1267_s12, 3 }
   0x4   : > { %p157_p2 = pnand %p1116_p0, %p156_p1 }
   0x5   : > { %p189_p3 = scmp.lt.s32.totalorder (!%p157_p2), %s1112_s13, 1  ;;  %s1269_s22 = smov (!%p157_p2), 96  }
   0x6   : > { %160 = sbr.rel (%p157_p2) target bundleno = 1579 (0x62b), region = 32  ;;  %s1270_s27 = smov (!%p157_p2), 112  }
   0x7   : > { %s1271_s28 = smov (!%p157_p2), 80   ;;  %s1272_s29 = smov (!%p157_p2), 64  }
   0x8   : > { %s1274_s30 = smov (!%p157_p2), 32  }
   0xb   : > { %s1734_s13 = smov (!%p189_p3, %s1112_s13), 1  ;;  %vm221_vm0 = vcmask 261120   ;;  %vm535_vm1 = vcmask 392448   ;;  %vm439_vm2 = vcmask 261248   ;;  %vm631_vm3 = vcmask 523648  }
   0xc   : > { %s1161_s14 = sshll.u32 %s1734_s13, 5  ;;  %s1160_s15 = sshll.u32 %s1734_s13, 6  ;;  %vm355_vm4 = vcmask 130048  }
   0xd   : > { %s198_s18 = scalar_lea.vmem %s1726_s1, %s1161_s14  ;;  %s193_s21 = scalar_lea.vmem %s1725_s0, %s1160_s15 }
   0xe   : > { %v1310_v0 = vld [vmem:[%s198_s18 + $0x18] sm:$0xff]  ;;  %v1312_v1 = vld [vmem:[%s198_s18 + $0x10] sm:$0xff]  ;;  %v1317_v3 = vld [vmem:[%s198_s18 + $0x8] sm:$0xff]  ;;  %s1121_s23 = sshll.u32 %s1734_s13, 2  ;;  %s207_s6 = scalar_lea.vmem %s1728_s3, %s1160_s15 }
   0xf   : > { %258 = vmatpush.msra.mxu0 %v1310_v0  ;;  %v1201_v2 = vpack.i.bf16 %v1312_v1, %v1310_v0  ;;  %v1319_v4 = vld [vmem:[%s198_s18] sm:$0xff]  ;;  %v209_v7 = vld [vmem:[%s193_s21 + $0x8] sm:$0xff]  ;;  %v210_v8 = vld [vmem:[%s193_s21 + $0x10] sm:$0xff]  ;;  %s202_s26 = scalar_lea.vmem %s1727_s2, %s1121_s23 }
  0x10   : > { %v1206_v5 = vpack.i.bf16 %v1319_v4, %v1317_v3  ;;  %v208_v6 = vld [vmem:[%s193_s21] sm:$0xff]  ;;  %v211_v9 = vld [vmem:[%s193_s21 + $0x18] sm:$0xff]  ;;  %v213_v11 = vld [vmem:[%s193_s21 + $0x28] sm:$0xff] }
  0x11   : > { %259 = vmatpush.msra.mxu0 %v1312_v1  ;;  %v212_v10 = vld [vmem:[%s193_s21 + $0x20] sm:$0xff]  ;;  %v214_v12 = vld [vmem:[%s193_s21 + $0x30] sm:$0xff]  ;;  %v215_v13 = vld [vmem:[%s193_s21 + $0x38] sm:$0xff] }
  0x12   : > { %v1393_v33 = vld [vmem:[%s202_s26] sm:$0x7] }
  0x13   : > { %260 = vmatpush.msra.mxu0 %v1317_v3  ;;  %v287_v34 = vperm.slane %v1393_v33, 2 }
  0x15   : > { %261 = vmatpush.msra.mxu0 %v1319_v4 }
  0x16   : > { %1124 = vmatmul.msk.f32.vlgmr.msra.gmra.mxu0 %vm221_vm0, %v208_v6 }
  0x1e   : > { %1125 = vmatmul.msk.f32.gmra.mxu0 %vm221_vm0, %v209_v7 }
  0x26   : > { %1126 = vmatmul.msk.f32.gmra.mxu0 %vm221_vm0, %v210_v8 }
  0x2e   : > { %1127 = vmatmul.msk.f32.gmra.mxu0 %vm221_vm0, %v211_v9 }
  0x36   : > { %1128 = vmatmul.msk.f32.gmra.mxu0 %vm221_vm0, %v212_v10 }
  0x3e   : > { %1129 = vmatmul.msk.f32.gmra.mxu0 %vm221_vm0, %v213_v11 }
  0x46   : > { %1130 = vmatmul.msk.f32.gmra.mxu0 %vm221_vm0, %v214_v12 }
  0x4e   : > { %1131 = vmatmul.msk.f32.gmra.mxu0 %vm221_vm0, %v215_v13 }
  0x93   : > { %v1339_v14 = vpop.f32.mrf.mxu0 }
  0x9b   : > { %v1341_v15 = vpop.f32.mrf.mxu0 }
  0x9c   : > { %v1181_v16 = vpack.i.bf16 %v1339_v14, %v1341_v15 }
  0xa3   : > { %v1345_v17 = vpop.f32.mrf.mxu0 }
  0xab   : > { %v1347_v18 = vpop.f32.mrf.mxu0 }
  0xac   : > { %302 = vrot.lane.b32.xlu2 %v1347_v18, %s1269_s22 }
  0xb3   : > { %v1351_v19 = vpop.f32.mrf.mxu0 }
  0xb4   : > { %v1191_v20 = vpack.i.bf16 %v1351_v19, %v1345_v17  ;;  %300 = vrot.lane.b32.xlu2 %v1345_v17, %s1269_s22 }
  0xbb   : > { %v1357_v21 = vpop.f32.mrf.mxu0 }
  0xbc   : > { %v1186_v22 = vpack.i.bf16 %v1357_v21, %v1347_v18  ;;  %306 = vrot.lane.b32.xlu1 %v1357_v21, %s1269_s22 }
  0xc3   : > { %v1363_v23 = vpop.f32.mrf.mxu0 }
  0xc4   : > { %304 = vrot.lane.b32.xlu1 %v1351_v19, %s1269_s22 }
  0xcb   : > { %v1367_v24 = vpop.f32.mrf.mxu0 }
  0xcc   : > { %296 = vrot.lane.b32.xlu1 %v1339_v14, %s1269_s22  ;;  %310 = vrot.lane.b32.xlu0 %v1367_v24, %s1269_s22 }
  0xd4   : > { %308 = vrot.lane.b32.xlu0 %v1363_v23, %s1269_s22 }
  0xdc   : > { %298 = vrot.lane.b32.xlu0 %v1341_v15, %s1269_s22 }
 0x106   : > { %v303_v28 = vpop.permute.xlu2 %302 }
 0x10e   : > { %v301_v30 = vpop.permute.xlu2 %300 }
 0x12e   : > { %v307_v26 = vpop.permute.xlu1 %306 }
 0x136   : > { %v305_v29 = vpop.permute.xlu1 %304 }
 0x13e   : > { %v311_v25 = vpop.permute.xlu0 %310  ;;  %v297_v32 = vpop.permute.xlu1 %296 }
 0x13f   : > { %1132 = vmatpush.xpose.msk.msra.mxu1 %vm221_vm0, %v311_v25 }
 0x146   : > { %v309_v27 = vpop.permute.xlu0 %308 }
 0x147   : > { %1133 = vmatpush.xpose.msk.msra.mxu1 %vm221_vm0, %v309_v27 }
 0x14b   : > { %1134 = vmatpush.xpose.msk.msra.mxu1 %vm221_vm0, %v307_v26 }
 0x14e   : > { %v299_v31 = vpop.permute.xlu0 %298 }
 0x14f   : > { %1135 = vmatpush.xpose.msk.msra.mxu1 %vm221_vm0, %v305_v29 }
 0x153   : > { %1136 = vmatpush.xpose.msk.msra.mxu1 %vm221_vm0, %v303_v28 }
 0x157   : > { %1137 = vmatpush.xpose.msk.msra.mxu1 %vm221_vm0, %v301_v30 }
 0x15b   : > { %1138 = vmatpush.xpose.msk.msra.mxu1 %vm221_vm0, %v299_v31 }
 0x15f   : > { %1139 = vmatpush.xpose.msk.msra.mxu1 %vm221_vm0, %v297_v32 }
 0x162   : > { %1140 = vmatmul.msk.f32.vlgmr.msra.gmra.mxu1 %vm221_vm0, %v1363_v23 }
 0x16a   : > { %1141 = vmatmul.msk.f32.gmra.mxu1 %vm221_vm0, %v1367_v24 }
 0x1df   : > { %v349_v35 = vpop.f32.mrf.mxu1 }
 0x1e0   : > { %v350_v36 = vadd.f32 %v349_v35, %v287_v34 }
 0x1e2   : > { %v536_v37 = vsel %vm535_vm1, %v350_v36, -inf  ;;  %v440_v38 = vsel %vm439_vm2, %v350_v36, -inf  ;;  %v632_v42 = vsel %vm631_vm3, %v350_v36, -inf  ;;  %v356_v43 = vsel %vm355_vm4, %v350_v36, -inf }
 0x1e3   : > { %537 = vmax.xlane.f32.xlu0 %v536_v37  ;;  %441 = vmax.xlane.f32.xlu2 %v440_v38 }
 0x1e7   : > { %v352_v39 = vpop.f32.mrf.mxu1 }
 0x1e8   : > { %v1397_v40 = vadd.f32 %v352_v39, %v287_v34 }
 0x1ea   : > { %v443_v41 = vsel %vm439_vm2, %v1397_v40, -inf  ;;  %v539_v44 = vsel %vm535_vm1, %v1397_v40, -inf  ;;  %v635_v45 = vsel %vm631_vm3, %v1397_v40, -inf  ;;  %v359_v28 = vsel %vm355_vm4, %v1397_v40, -inf }
 0x1eb   : > { %444 = vmax.xlane.f32.xlu1 %v443_v41  ;;  %633 = vmax.xlane.f32.xlu2 %v632_v42 }
 0x1ec   : > { %357 = vmax.xlane.f32.xlu0 %v356_v43 }
 0x1f3   : > { %540 = vmax.xlane.f32.xlu2 %v539_v44 }
 0x1f4   : > { %636 = vmax.xlane.f32.xlu0 %v635_v45 }
 0x256   : > { %v538_v46 = vpop.xlane.xlu0 %537  ;;  %v442_v47 = vpop.xlane.xlu2 %441 }
 0x257   : > { %v542_v48 = vsub.f32 %v350_v36, %v538_v46  ;;  %v446_v49 = vsub.f32 %v350_v36, %v442_v47 }
 0x259   : > { %v544_v50 = vmul.f32 1.442695, %v542_v48  ;;  %v448_v51 = vmul.f32 1.442695, %v446_v49 }
 0x25b   : > { %1211 = vpow2.f32 %v544_v50 }
 0x25c   : > { %1213 = vpow2.f32 %v448_v51 }
 0x25e   : > { %v445_v52 = vpop.xlane.xlu1 %444  ;;  %v634_v53 = vpop.xlane.xlu2 %633 }
 0x25f   : > { %v447_v54 = vsub.f32 %v1397_v40, %v445_v52  ;;  %v638_v55 = vsub.f32 %v350_v36, %v634_v53  ;;  %v358_v56 = vpop.xlane.xlu0 %357 }
 0x260   : > { %v362_v13 = vsub.f32 %v350_v36, %v358_v56 }
 0x261   : > { %v1405_v57 = vpop.eup %1211  ;;  %v450_v58 = vmul.f32 1.442695, %v447_v54  ;;  %v640_v59 = vmul.f32 1.442695, %v638_v55 }
 0x262   : > { %v1407_v60 = vpop.eup %1213  ;;  %550 = vrot.lane.b32.xlu2 %v1405_v57, %s1269_s22  ;;  %v364_v25 = vmul.f32 1.442695, %v362_v13 }
 0x263   : > { %1215 = vpow2.f32 %v450_v58  ;;  %454 = vrot.lane.b32.xlu1 %v1407_v60, %s1270_s27 }
 0x264   : > { %1217 = vpow2.f32 %v640_v59 }
 0x266   : > { %v541_v61 = vpop.xlane.xlu2 %540 }
 0x267   : > { %v543_v62 = vsub.f32 %v1397_v40, %v541_v61  ;;  %v637_v63 = vpop.xlane.xlu0 %636 }
 0x268   : > { %v639_v6 = vsub.f32 %v1397_v40, %v637_v63 }
 0x269   : > { %v1415_v7 = vpop.eup %1215  ;;  %v546_v8 = vmul.f32 1.442695, %v543_v62 }
 0x26a   : > { %v1417_v9 = vpop.eup %1217  ;;  %v642_v10 = vmul.f32 1.442695, %v639_v6  ;;  %456 = vrot.lane.b32.xlu0 %v1415_v7, %s1270_s27 }
 0x26b   : > { %1219 = vpow2.f32 %v546_v8  ;;  %646 = vrot.lane.b32.xlu2 %v1417_v9, %s1271_s28 }
 0x26c   : > { %1221 = vpow2.f32 %v642_v10 }
 0x26d   : > { %1223 = vpow2.f32 %v364_v25 }
 0x271   : > { %v1423_v11 = vpop.eup %1219 }
 0x272   : > { %v1425_v12 = vpop.eup %1221  ;;  %552 = vrot.lane.b32.xlu1 %v1423_v11, %s1269_s22 }
 0x273   : > { %648 = vrot.lane.b32.xlu2 %v1425_v12, %s1271_s28  ;;  %v1431_v26 = vpop.eup %1223 }
 0x274   : > { %v368_v27 = vsel %vm355_vm4, %v1431_v26, 0.0 }
 0x294   : > { %369 = vadd.xlane.f32.xlu0 %v368_v27 }
 0x29c   : > { %360 = vmax.xlane.f32.xlu1 %v359_v28 }
 0x2bc   : > { %v551_v29 = vpop.permute.xlu2 %550 }
 0x2bd   : > { %v556_v30 = vsel %vm355_vm4, %v551_v29, 0.0 }
 0x2be   : > { %557 = vadd.xlane.f32.xlu0 %v556_v30 }
 0x2c5   : > { %v647_v31 = vpop.permute.xlu2 %646 }
 0x2c6   : > { %v652_v32 = vsel %vm355_vm4, %v647_v31, 0.0 }
 0x2c7   : > { %653 = vadd.xlane.f32.xlu1 %v652_v32 }
 0x2cd   : > { %v649_v44 = vpop.permute.xlu2 %648 }
 0x2ce   : > { %v655_v45 = vsel %vm355_vm4, %v649_v44, 0.0 }
 0x2d5   : > { %v455_v34 = vpop.permute.xlu1 %454 }
 0x2d6   : > { %v460_v35 = vsel %vm355_vm4, %v455_v34, 0.0 }
 0x2d7   : > { %461 = vadd.xlane.f32.xlu2 %v460_v35 }
 0x2dc   : > { %v457_v36 = vpop.permute.xlu0 %456 }
 0x2dd   : > { %v463_v37 = vsel %vm355_vm4, %v457_v36, 0.0 }
 0x2de   : > { %464 = vadd.xlane.f32.xlu1 %v463_v37 }
 0x2e4   : > { %v553_v38 = vpop.permute.xlu1 %552 }
 0x2e5   : > { %v559_v39 = vsel %vm355_vm4, %v553_v38, 0.0 }
 0x2e6   : > { %560 = vadd.xlane.f32.xlu0 %v559_v39 }
 0x2ef   : > { %1187 = vrot.lane.b32.xlu2 %v1186_v22, %s1272_s29 }
 0x2fa   : > { %1182 = vrot.lane.b32.xlu0 %v1181_v16, %s1272_s29 }
 0x307   : > { %v1456_v21 = vpop.xlane.xlu0 %369 }
 0x30f   : > { %v361_v41 = vpop.xlane.xlu1 %360 }
 0x310   : > { %v363_v42 = vsub.f32 %v1397_v40, %v361_v41 }
 0x312   : > { %v366_v43 = vmul.f32 1.442695, %v363_v42 }
 0x314   : > { %1225 = vpow2.f32 %v366_v43 }
 0x318   : > { %656 = vadd.xlane.f32.xlu2 %v655_v45 }
 0x31a   : > { %v1452_v46 = vpop.eup %1225 }
 0x31b   : > { %v371_v18 = vsel %vm355_vm4, %v1452_v46, 0.0 }
 0x31c   : > { %372 = vadd.xlane.f32.xlu1 %v371_v18 }
 0x331   : > { %v558_v22 = vpop.xlane.xlu0 %557 }
 0x332   : > { %1227 = vrcp.f32 %v558_v22  ;;  %v573_v40 = vand.u32 2147483648, %v558_v22  ;;  %v571_v48 = vand.u32 2147483647, %v558_v22  ;;  %vm567_vm6 = vweird.f32 %v558_v22 }
 0x334   : > { %v574_v50 = vor.u32 1.1754944e-38, %v573_v40  ;;  %vm572_vm8 = vcmp.eq.f32.partialorder %v571_v48, 8.507059e+37 }
 0x335   : > { %1192 = vrot.lane.b32.xlu1 %v1191_v20, %s1272_s29  ;;  %v1196_v20 = vpack.i.bf16 %v1363_v23, %v1367_v24 }
 0x338   : > { %v1228_v14 = vpop.eup %1227 }
 0x339   : > { %v563_v15 = vmul.f32 %v1228_v14, %v558_v22  ;;  %vm568_vm5 = vweird.f32 %v1228_v14 }
 0x33a   : > { %vm569_vm7 = vmor %vm567_vm6, %vm568_vm5  ;;  %v1464_v17 = vpop.xlane.xlu1 %653 }
 0x33b   : > { %v564_v16 = vsub.f32 1.0, %v563_v15  ;;  %vm663_vm3 = vweird.f32 %v1464_v17 }
 0x33d   : > { %v565_v47 = vmul.f32 %v1228_v14, %v564_v16  ;;  %v669_v16 = vand.u32 2147483648, %v1464_v17 }
 0x33f   : > { %v566_v49 = vadd.f32 %v1228_v14, %v565_v47 }
 0x341   : > { %v570_v51 = vsel %vm569_vm7, %v1228_v14, %v566_v49  ;;  %v667_v49 = vand.u32 2147483647, %v1464_v17 }
 0x342   : > { %v575_v52 = vsel %vm572_vm8, %v574_v50, %v570_v51 }
 0x343   : > { %v576_v53 = vmul.f32 %v1405_v57, %v575_v52 }
 0x345   : > { %594 = vrot.lane.b32.xlu2 %v576_v53, %s1269_s22 }
 0x34a   : > { %v462_v19 = vpop.xlane.xlu2 %461 }
 0x34b   : > { %1229 = vrcp.f32 %v462_v19  ;;  %v477_v62 = vand.u32 2147483648, %v462_v19  ;;  %v475_v10 = vand.u32 2147483647, %v462_v19  ;;  %vm471_vm10 = vweird.f32 %v462_v19 }
 0x34c   : > { %1231 = vrcp.f32 %v1464_v17 }
 0x34d   : > { %1197 = vrot.lane.b32.xlu2 %v1196_v20, %s1272_s29  ;;  %1233 = vrcp.f32 %v1456_v21  ;;  %v478_v28 = vor.u32 1.1754944e-38, %v477_v62  ;;  %vm476_vm12 = vcmp.eq.f32.partialorder %v475_v10, 8.507059e+37 }
 0x351   : > { %v1230_v54 = vpop.eup %1229  ;;  %v465_v55 = vpop.xlane.xlu1 %464 }
 0x352   : > { %v467_v56 = vmul.f32 %v1230_v54, %v462_v19  ;;  %v1471_v58 = vpop.permute.xlu2 %1187  ;;  %1235 = vrcp.f32 %v465_v55  ;;  %v1473_v57 = vpop.eup %1231  ;;  %vm472_vm9 = vweird.f32 %v1230_v54  ;;  %v492_v36 = vand.u32 2147483648, %v465_v55 }
 0x353   : > { %v1189_v59 = vunpack.i.l.bf16 %v1471_v58  ;;  %v1476_v63 = vpop.eup %1233  ;;  %v659_v6 = vmul.f32 %v1473_v57, %v1464_v17  ;;  %vm473_vm11 = vmor %vm471_vm10, %vm472_vm9  ;;  %v490_v39 = vand.u32 2147483647, %v465_v55  ;;  %vm486_vm14 = vweird.f32 %v465_v55 }
 0x354   : > { %v468_v61 = vsub.f32 1.0, %v467_v56  ;;  %v375_v27 = vmul.f32 %v1476_v63, %v1456_v21  ;;  %v493_v45 = vor.u32 1.1754944e-38, %v492_v36  ;;  %vm664_vm2 = vweird.f32 %v1473_v57 }
 0x355   : > { %526 = vmatpush.msra.mxu3 %v1189_v59  ;;  %v660_v31 = vsub.f32 1.0, %v659_v6  ;;  %vm491_vm1 = vcmp.eq.f32.partialorder %v490_v39, 8.507059e+37  ;;  %vm1492_vm5 = vmor %vm663_vm3, %vm664_vm2  ;;  %vm380_vm7 = vweird.f32 %v1476_v63  ;;  %v385_v19 = vand.u32 2147483648, %v1456_v21 }
 0x356   : > { %v469_v8 = vmul.f32 %v1230_v54, %v468_v61  ;;  %v376_v41 = vsub.f32 1.0, %v375_v27  ;;  %v670_v17 = vor.u32 1.1754944e-38, %v669_v16  ;;  %vm379_vm9 = vweird.f32 %v1456_v21 }
 0x357   : > { %v661_v42 = vmul.f32 %v1473_v57, %v660_v31  ;;  %vm668_vm10 = vcmp.eq.f32.partialorder %v667_v49, 8.507059e+37  ;;  %v386_v62 = vor.u32 1.1754944e-38, %v385_v19 }
 0x358   : > { %v1236_v13 = vpop.eup %1235  ;;  %v470_v25 = vadd.f32 %v1230_v54, %v469_v8  ;;  %v377_v14 = vmul.f32 %v1476_v63, %v376_v41 }
 0x359   : > { %v482_v29 = vmul.f32 %v1236_v13, %v465_v55  ;;  %v561_v30 = vpop.xlane.xlu0 %560  ;;  %vm487_vm13 = vweird.f32 %v1236_v13  ;;  %v383_v55 = vand.u32 2147483647, %v1456_v21 }
 0x35a   : > { %1237 = vrcp.f32 %v561_v30  ;;  %v474_v32 = vsel %vm473_vm11, %v1230_v54, %v470_v25  ;;  %vm488_vm15 = vmor %vm486_vm14, %vm487_vm13  ;;  %v588_v48 = vand.u32 2147483648, %v561_v30  ;;  %v586_v52 = vand.u32 2147483647, %v561_v30 }
 0x35b   : > { %v483_v34 = vsub.f32 1.0, %v482_v29  ;;  %v479_v35 = vsel %vm476_vm12, %v478_v28, %v474_v32  ;;  %vm582_vm8 = vweird.f32 %v561_v30  ;;  %vm381_vm13 = vmor %vm379_vm9, %vm380_vm7  ;;  %vm384_vm14 = vcmp.eq.f32.partialorder %v383_v55, 8.507059e+37 }
 0x35c   : > { %v480_v37 = vmul.f32 %v1407_v60, %v479_v35  ;;  %v662_v60 = vadd.f32 %v1473_v57, %v661_v42  ;;  %v589_v54 = vor.u32 1.1754944e-38, %v588_v48  ;;  %vm587_vm12 = vcmp.eq.f32.partialorder %v586_v52, 8.507059e+37 }
 0x35d   : > { %v484_v38 = vmul.f32 %v1236_v13, %v483_v34 }
 0x35e   : > { %498 = vrot.lane.b32.xlu0 %v480_v37, %s1270_s27  ;;  %v666_v53 = vsel %vm1492_vm5, %v1473_v57, %v662_v60 }
 0x35f   : > { %v485_v43 = vadd.f32 %v1236_v13, %v484_v38  ;;  %v671_v56 = vsel %vm668_vm10, %v670_v17, %v666_v53 }
 0x360   : > { %v1238_v44 = vpop.eup %1237  ;;  %v672_v10 = vmul.f32 %v1417_v9, %v671_v56  ;;  %v1273_v56 = vmov 32.0  }
 0x361   : > { %v578_v18 = vmul.f32 %v1238_v44, %v561_v30  ;;  %v489_v22 = vsel %vm488_vm15, %v1236_v13, %v485_v43  ;;  %vm583_vm6 = vweird.f32 %v1238_v44 }
 0x362   : > { %v494_v15 = vsel %vm491_vm1, %v493_v45, %v489_v22  ;;  %vm584_vm11 = vmor %vm582_vm8, %vm583_vm6 }
 0x363   : > { %v579_v40 = vsub.f32 1.0, %v578_v18  ;;  %v495_v47 = vmul.f32 %v1415_v7, %v494_v15  ;;  %v378_v7 = vadd.f32 %v1476_v63, %v377_v14 }
 0x365   : > { %v580_v50 = vmul.f32 %v1238_v44, %v579_v40  ;;  %v382_v61 = vsel %vm381_vm13, %v1476_v63, %v378_v7  ;;  %v1190_v63 = vunpack.i.h.bf16 %v1471_v58 }
 0x366   : > { %500 = vrot.lane.b32.xlu0 %v495_v47, %s1270_s27  ;;  %v387_v25 = vsel %vm384_vm14, %v386_v62, %v382_v61 }
 0x367   : > { %v581_v20 = vadd.f32 %v1238_v44, %v580_v50  ;;  %v388_v27 = vmul.f32 %v1431_v26, %v387_v25 }
 0x369   : > { %v585_v59 = vsel %vm584_vm11, %v1238_v44, %v581_v20 }
 0x36a   : > { %v590_v57 = vsel %vm587_vm12, %v589_v54, %v585_v59 }
 0x36b   : > { %v591_v6 = vmul.f32 %v1423_v11, %v590_v57 }
 0x36c   : > { %v1183_v8 = vpop.permute.xlu0 %1182 }
 0x36d   : > { %596 = vrot.lane.b32.xlu1 %v591_v6, %s1269_s22  ;;  %v1184_v13 = vunpack.i.l.bf16 %v1183_v8  ;;  %v1185_v21 = vunpack.i.h.bf16 %v1183_v8 }
 0x36e   : > { %690 = vrot.lane.b32.xlu0 %v672_v10, %s1271_s28 }
 0x36f   : > { %430 = vmatpush.msra.mxu2 %v1184_v13 }
 0x371   : > { %431 = vmatpush.msra.mxu2 %v1185_v21 }
 0x372   : > { %1142 = vmatmul.msk.f32.vlgmr.msra.gmra.mxu2 %vm355_vm4, %v388_v27 }
 0x373   : > { %622 = vmatpush.msrb.mxu2 %v1190_v63 }
 0x38b   : > { %v657_v11 = vpop.xlane.xlu2 %656 }
 0x38c   : > { %1239 = vrcp.f32 %v657_v11  ;;  %v684_v32 = vand.u32 2147483648, %v657_v11  ;;  %v682_v34 = vand.u32 2147483647, %v657_v11  ;;  %vm678_vm1 = vweird.f32 %v657_v11 }
 0x38e   : > { %v685_v58 = vor.u32 1.1754944e-38, %v684_v32  ;;  %vm683_vm3 = vcmp.eq.f32.partialorder %v682_v34, 8.507059e+37 }
 0x38f   : > { %v373_v9 = vpop.xlane.xlu1 %372 }
 0x390   : > { %1241 = vrcp.f32 %v373_v9  ;;  %v400_v38 = vand.u32 2147483648, %v373_v9  ;;  %v398_v42 = vand.u32 2147483647, %v373_v9  ;;  %vm394_vm6 = vweird.f32 %v373_v9 }
 0x391   : > { %1243 = vrcp.f32 %v1273_v56 }
 0x392   : > { %v1240_v28 = vpop.eup %1239  ;;  %v401_v18 = vor.u32 1.1754944e-38, %v400_v38  ;;  %vm399_vm8 = vcmp.eq.f32.partialorder %v398_v42, 8.507059e+37 }
 0x393   : > { %v674_v29 = vmul.f32 %v1240_v28, %v657_v11  ;;  %vm679_vm15 = vweird.f32 %v1240_v28 }
 0x394   : > { %vm680_vm2 = vmor %vm678_vm1, %vm679_vm15 }
 0x395   : > { %v675_v30 = vsub.f32 1.0, %v674_v29 }
 0x396   : > { %v1242_v31 = vpop.eup %1241 }
 0x397   : > { %v676_v35 = vmul.f32 %v1240_v28, %v675_v30  ;;  %v390_v36 = vmul.f32 %v1242_v31, %v373_v9  ;;  %vm395_vm5 = vweird.f32 %v1242_v31  ;;  %v1244_v57 = vpop.eup %1243 }
 0x398   : > { %vm396_vm7 = vmor %vm394_vm6, %vm395_vm5  ;;  %v752_v62 = vmul.f32 32.0, %v1244_v57 }
 0x399   : > { %v391_v26 = vsub.f32 1.0, %v390_v36  ;;  %v677_v37 = vadd.f32 %v1240_v28, %v676_v35 }
 0x39a   : > { %v753_v8 = vsub.f32 1.0, %v752_v62 }
 0x39b   : > { %v392_v39 = vmul.f32 %v1242_v31, %v391_v26  ;;  %v681_v41 = vsel %vm680_vm2, %v1240_v28, %v677_v37 }
 0x39c   : > { %v686_v43 = vsel %vm683_vm3, %v685_v58, %v681_v41  ;;  %v754_v10 = vmul.f32 %v1244_v57, %v753_v8 }
 0x39d   : > { %v687_v44 = vmul.f32 %v1425_v12, %v686_v43  ;;  %v393_v45 = vadd.f32 %v1242_v31, %v392_v39 }
 0x39e   : > { %v755_v27 = vadd.f32 %v1244_v57, %v754_v10 }
 0x39f   : > { %692 = vrot.lane.b32.xlu1 %v687_v44, %s1271_s28  ;;  %v595_v22 = vpop.permute.xlu2 %594  ;;  %v397_v14 = vsel %vm396_vm7, %v1242_v31, %v393_v45 }
 0x3a0   : > { %v402_v15 = vsel %vm399_vm8, %v401_v18, %v397_v14 }
 0x3a1   : > { %v403_v60 = vmul.f32 %v1452_v46, %v402_v15 }
 0x3a3   : > { %1143 = vmatmul.msk.f32.gmra.mxu2 %vm355_vm4, %v403_v60 }
 0x3a7   : > { %v1193_v16 = vpop.permute.xlu1 %1192  ;;  %v1198_v40 = vpop.permute.xlu2 %1197 }
 0x3a8   : > { %v1194_v47 = vunpack.i.l.bf16 %v1193_v16  ;;  %v1195_v48 = vunpack.i.h.bf16 %v1193_v16  ;;  %v1199_v49 = vunpack.i.l.bf16 %v1198_v40  ;;  %v1200_v12 = vunpack.i.h.bf16 %v1198_v40 }
 0x3aa   : > { %527 = vmatpush.msra.mxu3 %v1194_v47  ;;  %623 = vmatpush.msrb.mxu2 %v1195_v48 }
 0x3ab   : > { %1146 = vmatmul.msk.f32.vlgmr.msrb.gmra.mxu2 %vm355_vm4, %v595_v22 }
 0x3ac   : > { %718 = vmatpush.msrb.mxu3 %v1199_v49 }
 0x3ae   : > { %719 = vmatpush.msrb.mxu3 %v1200_v12 }
 0x3d0   : > { %v499_v50 = vpop.permute.xlu0 %498 }
 0x3d1   : > { %1144 = vmatmul.msk.f32.vlgmr.msra.gmra.mxu3 %vm355_vm4, %v499_v50 }
 0x3d8   : > { %v501_v51 = vpop.permute.xlu0 %500 }
 0x3d9   : > { %1145 = vmatmul.msk.f32.gmra.mxu3 %vm355_vm4, %v501_v51 }
 0x3df   : > { %v597_v46 = vpop.permute.xlu1 %596 }
 0x3e0   : > { %v691_v52 = vpop.permute.xlu0 %690  ;;  %1147 = vmatmul.msk.f32.gmra.mxu2 %vm355_vm4, %v597_v46 }
 0x3e1   : > { %1148 = vmatmul.msk.f32.vlgmr.msrb.gmra.mxu3 %vm355_vm4, %v691_v52 }
 0x3f5   : > { %v433_v53 = vpop.f32.mrf.mxu2 }
 0x3f6   : > { %v727_v7 = vsel %vm221_vm0, %v433_v53, 0.0 }
 0x3f7   : > { %728 = vadd.xlane.f32.xlu2 %v727_v7 }
 0x411   : > { %v693_v19 = vpop.permute.xlu1 %692 }
 0x412   : > { %1149 = vmatmul.msk.f32.gmra.mxu3 %vm355_vm4, %v693_v19  ;;  %vm756_vm4 = vweird.f32 %v1244_v57 }
 0x413   : > { %v1529_v11 = vsel %vm756_vm4, %v1244_v57, %v755_v27 }
 0x426   : > { %v436_v17 = vpop.f32.mrf.mxu2 }
 0x427   : > { %v730_v20 = vsel %vm221_vm0, %v436_v17, 0.0 }
 0x428   : > { %731 = vadd.xlane.f32.xlu1 %v730_v20 }
 0x42e   : > { %v625_v54 = vpop.f32.mrf.mxu2 }
 0x42f   : > { %v739_v55 = vsel %vm221_vm0, %v625_v54, 0.0 }
 0x430   : > { %740 = vadd.xlane.f32.xlu0 %v739_v55 }
 0x454   : > { %v529_v59 = vpop.f32.mrf.mxu3 }
 0x455   : > { %v733_v61 = vsel %vm221_vm0, %v529_v59, 0.0 }
 0x456   : > { %734 = vadd.xlane.f32.xlu0 %v733_v61 }
 0x45c   : > { %v532_v6 = vpop.f32.mrf.mxu3 }
 0x45d   : > { %v736_v29 = vsel %vm221_vm0, %v532_v6, 0.0 }
 0x463   : > { %v628_v13 = vpop.f32.mrf.mxu2 }
 0x464   : > { %v721_v25 = vpop.f32.mrf.mxu3  ;;  %v742_v21 = vsel %vm221_vm0, %v628_v13, 0.0 }
 0x465   : > { %v745_v63 = vsel %vm221_vm0, %v721_v25, 0.0  ;;  %743 = vadd.xlane.f32.xlu2 %v742_v21 }
 0x466   : > { %746 = vadd.xlane.f32.xlu1 %v745_v63 }
 0x46a   : > { %v729_v9 = vpop.xlane.xlu2 %728 }
 0x46b   : > { %v758_v28 = vmul.f32 %v1529_v11, %v729_v9 }
 0x46d   : > { %v1533_v30 = vsub.f32 %v433_v53, %v758_v28  ;;  %737 = vadd.xlane.f32.xlu2 %v736_v29 }
 0x46f   : > { %v774_v31 = vmul.f32 %v1533_v30, %v1533_v30 }
 0x471   : > { %v782_v32 = vsel %vm221_vm0, %v774_v31, 0.0 }
 0x472   : > { %783 = vadd.xlane.f32.xlu1 %v782_v32 }
 0x495   : > { %v724_v34 = vpop.f32.mrf.mxu3 }
 0x496   : > { %v748_v35 = vsel %vm221_vm0, %v724_v34, 0.0 }
 0x497   : > { %749 = vadd.xlane.f32.xlu0 %v748_v35 }
 0x49b   : > { %v732_v36 = vpop.xlane.xlu1 %731 }
 0x49c   : > { %v759_v26 = vmul.f32 %v1529_v11, %v732_v36 }
 0x49e   : > { %v1540_v37 = vsub.f32 %v436_v17, %v759_v26 }
 0x4a0   : > { %v775_v58 = vmul.f32 %v1540_v37, %v1540_v37 }
 0x4a2   : > { %v785_v38 = vsel %vm221_vm0, %v775_v58, 0.0 }
 0x4a3   : > { %786 = vadd.xlane.f32.xlu0 %v785_v38  ;;  %v741_v39 = vpop.xlane.xlu0 %740 }
 0x4a4   : > { %v762_v41 = vmul.f32 %v1529_v11, %v741_v39 }
 0x4a6   : > { %v1546_v42 = vsub.f32 %v625_v54, %v762_v41 }
 0x4a8   : > { %v778_v43 = vmul.f32 %v1546_v42, %v1546_v42 }
 0x4aa   : > { %v794_v44 = vsel %vm221_vm0, %v778_v43, 0.0 }
 0x4ab   : > { %795 = vadd.xlane.f32.xlu2 %v794_v44 }
 0x4c9   : > { %v735_v45 = vpop.xlane.xlu0 %734 }
 0x4ca   : > { %v760_v18 = vmul.f32 %v1529_v11, %v735_v45 }
 0x4cc   : > { %v1552_v22 = vsub.f32 %v529_v59, %v760_v18 }
 0x4ce   : > { %v776_v14 = vmul.f32 %v1552_v22, %v1552_v22 }
 0x4d0   : > { %v788_v15 = vsel %vm221_vm0, %v776_v14, 0.0 }
 0x4d1   : > { %789 = vadd.xlane.f32.xlu2 %v788_v15 }
 0x4d8   : > { %v744_v60 = vpop.xlane.xlu2 %743 }
 0x4d9   : > { %v747_v16 = vpop.xlane.xlu1 %746  ;;  %v763_v40 = vmul.f32 %v1529_v11, %v744_v60 }
 0x4da   : > { %v764_v47 = vmul.f32 %v1529_v11, %v747_v16 }
 0x4db   : > { %v1559_v48 = vsub.f32 %v628_v13, %v763_v40 }
 0x4dc   : > { %v1561_v49 = vsub.f32 %v721_v25, %v764_v47 }
 0x4dd   : > { %v779_v12 = vmul.f32 %v1559_v48, %v1559_v48 }
 0x4de   : > { %v780_v50 = vmul.f32 %v1561_v49, %v1561_v49 }
 0x4df   : > { %v797_v51 = vsel %vm221_vm0, %v779_v12, 0.0 }
 0x4e0   : > { %v800_v46 = vsel %vm221_vm0, %v780_v50, 0.0  ;;  %798 = vadd.xlane.f32.xlu1 %v797_v51  ;;  %v738_v52 = vpop.xlane.xlu2 %737 }
 0x4e1   : > { %801 = vadd.xlane.f32.xlu0 %v800_v46  ;;  %v761_v53 = vmul.f32 %v1529_v11, %v738_v52 }
 0x4e3   : > { %v1570_v7 = vsub.f32 %v532_v6, %v761_v53 }
 0x4e5   : > { %v777_v19 = vmul.f32 %v1570_v7, %v1570_v7  ;;  %v784_v57 = vpop.xlane.xlu1 %783 }
 0x4e6   : > { %v806_v0 = vmul.f32 %v784_v57, %v1529_v11  ;;  %v1632_v57 = vperm.slane %v1393_v33, 0 }
 0x4e7   : > { %v791_v17 = vsel %vm221_vm0, %v777_v19, 0.0 }
 0x4e8   : > { %792 = vadd.xlane.f32.xlu2 %v791_v17 }
 0x4f9   : > { %1202 = vrot.lane.b32.xlu1 %v1201_v2, %s1274_s30  ;;  %v814_v2 = vadd.f32 1e-05, %v806_v0 }
 0x4fb   : > { %1245 = vrsqrt.f32 %v814_v2  ;;  %vm828_vm11 = vweird.f32 %v814_v2 }
 0x500   : > { %1207 = vrot.lane.b32.xlu2 %v1206_v5, %s1274_s30 }
 0x501   : > { %v1246_v8 = vpop.eup %1245 }
 0x502   : > { %v823_v25 = vmul.f32 %v1246_v8, %v814_v2  ;;  %vm829_vm9 = vweird.f32 %v1246_v8 }
 0x503   : > { %vm830_vm12 = vmor %vm828_vm11, %vm829_vm9 }
 0x50a   : > { %v750_v20 = vpop.xlane.xlu0 %749 }
 0x50b   : > { %v765_v54 = vmul.f32 %v1529_v11, %v750_v20 }
 0x50d   : > { %v1582_v55 = vsub.f32 %v724_v34, %v765_v54  ;;  %v824_v34 = vmul.f32 %v1246_v8, %v823_v25 }
 0x50f   : > { %v781_v56 = vmul.f32 %v1582_v55, %v1582_v55  ;;  %v825_v58 = vmul.f32 0.5, %v824_v34 }
 0x511   : > { %v803_v59 = vsel %vm221_vm0, %v781_v56, 0.0  ;;  %v826_v18 = vsub.f32 1.5, %v825_v58 }
 0x512   : > { %804 = vadd.xlane.f32.xlu0 %v803_v59 }
 0x513   : > { %v827_v12 = vmul.f32 %v1246_v8, %v826_v18 }
 0x515   : > { %v831_v19 = vsel %vm830_vm12, %v1246_v8, %v827_v12 }
 0x516   : > { %v787_v3 = vpop.xlane.xlu0 %786 }
 0x517   : > { %v807_v5 = vmul.f32 %v787_v3, %v1529_v11 }
 0x519   : > { %v1590_v62 = vadd.f32 1e-05, %v807_v5 }
 0x51b   : > { %vm838_vm2 = vweird.f32 %v1590_v62 }
 0x51e   : > { %v796_v61 = vpop.xlane.xlu2 %795 }
 0x51f   : > { %v810_v1 = vmul.f32 %v796_v61, %v1529_v11  ;;  %v902_v61 = vmul.f32 %v831_v19, %v1533_v30  ;;  %v1644_v30 = vperm.slane %v1393_v33, 1 }
 0x521   : > { %v818_v4 = vadd.f32 1e-05, %v810_v1 }
 0x523   : > { %1247 = vrsqrt.f32 %v818_v4  ;;  %vm868_vm13 = vweird.f32 %v818_v4 }
 0x524   : > { %1249 = vrsqrt.f32 %v1590_v62 }
 0x529   : > { %v1248_v10 = vpop.eup %1247 }
 0x52a   : > { %v863_v27 = vmul.f32 %v1248_v10, %v818_v4  ;;  %v1600_v32 = vpop.eup %1249  ;;  %vm869_vm10 = vweird.f32 %v1248_v10 }
 0x52b   : > { %v833_v26 = vmul.f32 %v1600_v32, %v1590_v62  ;;  %vm870_vm14 = vmor %vm868_vm13, %vm869_vm10  ;;  %vm839_vm15 = vweird.f32 %v1600_v32 }
 0x52c   : > { %v864_v36 = vmul.f32 %v1248_v10, %v863_v27  ;;  %vm1647_vm3 = vmor %vm838_vm2, %vm839_vm15 }
 0x52d   : > { %v834_v44 = vmul.f32 %v1600_v32, %v833_v26 }
 0x52e   : > { %v865_v39 = vmul.f32 0.5, %v864_v36 }
 0x52f   : > { %v835_v47 = vmul.f32 0.5, %v834_v44 }
 0x530   : > { %v866_v16 = vsub.f32 1.5, %v865_v39 }
 0x531   : > { %v836_v53 = vsub.f32 1.5, %v835_v47 }
 0x532   : > { %v867_v46 = vmul.f32 %v1248_v10, %v866_v16 }
 0x533   : > { %v837_v0 = vmul.f32 %v1600_v32, %v836_v53 }
 0x534   : > { %v871_v54 = vsel %vm870_vm14, %v1248_v10, %v867_v46 }
 0x535   : > { %v906_v1 = vmul.f32 %v871_v54, %v1546_v42  ;;  %v911_v42 = vmul.f32 %v1632_v57, %v902_v61  ;;  %v841_v27 = vsel %vm1647_vm3, %v1600_v32, %v837_v0 }
 0x536   : > { %v903_v36 = vmul.f32 %v841_v27, %v1540_v37 }
 0x537   : > { %v915_v62 = vmul.f32 %v1632_v57, %v906_v1 }
 0x538   : > { %v912_v37 = vmul.f32 %v1632_v57, %v903_v36 }
 0x539   : > { %v924_v32 = vadd.f32 %v1644_v30, %v915_v62 }
 0x53a   : > { %v921_v18 = vadd.f32 %v1644_v30, %v912_v37 }
 0x544   : > { %v790_v6 = vpop.xlane.xlu2 %789 }
 0x545   : > { %v808_v13 = vmul.f32 %v790_v6, %v1529_v11 }
 0x547   : > { %v1595_v28 = vadd.f32 1e-05, %v808_v13 }
 0x549   : > { %vm848_vm4 = vweird.f32 %v1595_v28 }
 0x553   : > { %v799_v21 = vpop.xlane.xlu1 %798 }
 0x554   : > { %v802_v63 = vpop.xlane.xlu0 %801  ;;  %v811_v9 = vmul.f32 %v799_v21, %v1529_v11 }
 0x555   : > { %v812_v29 = vmul.f32 %v802_v63, %v1529_v11 }
 0x556   : > { %v1598_v31 = vadd.f32 1e-05, %v811_v9 }
 0x557   : > { %v1602_v35 = vadd.f32 1e-05, %v812_v29 }
 0x558   : > { %1251 = vrsqrt.f32 %v1598_v31  ;;  %vm878_vm5 = vweird.f32 %v1598_v31 }
 0x559   : > { %1253 = vrsqrt.f32 %v1595_v28  ;;  %vm888_vm10 = vweird.f32 %v1602_v35 }
 0x55a   : > { %1255 = vrsqrt.f32 %v1602_v35 }
 0x55b   : > { %v793_v38 = vpop.xlane.xlu2 %792 }
 0x55c   : > { %v809_v41 = vmul.f32 %v793_v38, %v1529_v11 }
 0x55e   : > { %v1610_v43 = vpop.eup %1251  ;;  %v1617_v15 = vadd.f32 1e-05, %v809_v41 }
 0x55f   : > { %v1613_v45 = vpop.eup %1253  ;;  %v873_v14 = vmul.f32 %v1610_v43, %v1598_v31  ;;  %vm879_vm1 = vweird.f32 %v1610_v43  ;;  %v920_v31 = vadd.f32 %v1644_v30, %v911_v42 }
 0x560   : > { %v1619_v60 = vpop.eup %1255  ;;  %v843_v50 = vmul.f32 %v1613_v45, %v1595_v28  ;;  %1257 = vrsqrt.f32 %v1617_v15  ;;  %vm880_vm6 = vmor %vm878_vm5, %vm879_vm1  ;;  %vm849_vm7 = vweird.f32 %v1613_v45  ;;  %vm858_vm13 = vweird.f32 %v1617_v15 }
 0x561   : > { %v874_v40 = vmul.f32 %v1610_v43, %v873_v14  ;;  %v883_v51 = vmul.f32 %v1619_v60, %v1602_v35  ;;  %vm889_vm8 = vweird.f32 %v1619_v60  ;;  %vm850_vm9 = vmor %vm848_vm4, %vm849_vm7 }
 0x562   : > { %v844_v17 = vmul.f32 %v1613_v45, %v843_v50  ;;  %vm890_vm11 = vmor %vm888_vm10, %vm889_vm8 }
 0x563   : > { %v875_v52 = vmul.f32 0.5, %v874_v40  ;;  %v884_v20 = vmul.f32 %v1619_v60, %v883_v51  ;;  %v1208_v5 = vpop.permute.xlu2 %1207 }
 0x564   : > { %v845_v2 = vmul.f32 0.5, %v844_v17  ;;  %v1209_v21 = vunpack.i.l.bf16 %v1208_v5  ;;  %v1210_v34 = vunpack.i.h.bf16 %v1208_v5 }
 0x565   : > { %v876_v56 = vsub.f32 1.5, %v875_v52  ;;  %v885_v3 = vmul.f32 0.5, %v884_v20 }
 0x566   : > { %v1629_v59 = vpop.eup %1257  ;;  %v846_v63 = vsub.f32 1.5, %v845_v2 }
 0x567   : > { %v877_v6 = vmul.f32 %v1610_v43, %v876_v56  ;;  %v853_v8 = vmul.f32 %v1629_v59, %v1617_v15  ;;  %v886_v33 = vsub.f32 1.5, %v885_v3  ;;  %vm859_vm12 = vweird.f32 %v1629_v59 }
 0x568   : > { %v847_v58 = vmul.f32 %v1613_v45, %v846_v63  ;;  %vm860_vm14 = vmor %vm858_vm13, %vm859_vm12 }
 0x569   : > { %v881_v9 = vsel %vm880_vm6, %v1610_v43, %v877_v6  ;;  %v854_v29 = vmul.f32 %v1629_v59, %v853_v8  ;;  %v887_v38 = vmul.f32 %v1619_v60, %v886_v33 }
 0x56a   : > { %v907_v26 = vmul.f32 %v881_v9, %v1559_v48  ;;  %v851_v41 = vsel %vm850_vm9, %v1613_v45, %v847_v58 }
 0x56b   : > { %v1203_v4 = vpop.permute.xlu1 %1202  ;;  %v855_v39 = vmul.f32 0.5, %v854_v29  ;;  %v891_v43 = vsel %vm890_vm11, %v1619_v60, %v887_v38  ;;  %v904_v14 = vmul.f32 %v851_v41, %v1552_v22 }
 0x56c   : > { %v1205_v10 = vunpack.i.h.bf16 %v1203_v4  ;;  %v1204_v13 = vunpack.i.l.bf16 %v1203_v4  ;;  %v916_v48 = vmul.f32 %v1632_v57, %v907_v26  ;;  %v908_v16 = vmul.f32 %v891_v43, %v1561_v49 }
 0x56d   : > { %v856_v44 = vsub.f32 1.5, %v855_v39  ;;  %v913_v45 = vmul.f32 %v1632_v57, %v904_v14 }
 0x56e   : > { %980 = vmatpush.msra.mxu2 %v1204_v13  ;;  %1163 = vmatpush.msra.mxu3 %v1204_v13  ;;  %v925_v28 = vadd.f32 %v1644_v30, %v916_v48  ;;  %v917_v60 = vmul.f32 %v1632_v57, %v908_v16 }
 0x56f   : > { %v857_v35 = vmul.f32 %v1629_v59, %v856_v44  ;;  %v922_v22 = vadd.f32 %v1644_v30, %v913_v45 }
 0x570   : > { %981 = vmatpush.msra.mxu2 %v1205_v10  ;;  %1164 = vmatpush.msra.mxu3 %v1205_v10  ;;  %v926_v49 = vadd.f32 %v1644_v30, %v917_v60 }
 0x571   : > { %v861_v40 = vsel %vm860_vm14, %v1629_v59, %v857_v35 }
 0x572   : > { %982 = vmatpush.msra.mxu2 %v1209_v21  ;;  %1165 = vmatpush.msra.mxu3 %v1209_v21  ;;  %v905_v47 = vmul.f32 %v861_v40, %v1570_v7 }
 0x574   : > { %983 = vmatpush.msra.mxu2 %v1210_v34  ;;  %1166 = vmatpush.msra.mxu3 %v1210_v34  ;;  %v914_v50 = vmul.f32 %v1632_v57, %v905_v47 }
 0x575   : > { %1150 = vmatmul.msk.f32.vlgmr.msra.gmra.mxu2 %vm221_vm0, %v920_v31  ;;  %1154 = vmatmul.msk.f32.vlgmr.msra.gmra.mxu3 %vm221_vm0, %v924_v32 }
 0x576   : > { %v923_v46 = vadd.f32 %v1644_v30, %v914_v50 }
 0x57d   : > { %1151 = vmatmul.msk.f32.gmra.mxu2 %vm221_vm0, %v921_v18  ;;  %1155 = vmatmul.msk.f32.gmra.mxu3 %vm221_vm0, %v925_v28 }
 0x585   : > { %v805_v12 = vpop.xlane.xlu0 %804  ;;  %1152 = vmatmul.msk.f32.gmra.mxu2 %vm221_vm0, %v922_v22  ;;  %1156 = vmatmul.msk.f32.gmra.mxu3 %vm221_vm0, %v926_v49 }
 0x586   : > { %v813_v15 = vmul.f32 %v805_v12, %v1529_v11 }
 0x588   : > { %v821_v51 = vadd.f32 1e-05, %v813_v15 }
 0x58a   : > { %1259 = vrsqrt.f32 %v821_v51  ;;  %vm898_vm1 = vweird.f32 %v821_v51 }
 0x58d   : > { %1153 = vmatmul.msk.f32.gmra.mxu2 %vm221_vm0, %v923_v46 }
 0x590   : > { %v1260_v52 = vpop.eup %1259 }
 0x591   : > { %v893_v53 = vmul.f32 %v1260_v52, %v821_v51  ;;  %vm899_vm15 = vweird.f32 %v1260_v52 }
 0x592   : > { %vm900_vm2 = vmor %vm898_vm1, %vm899_vm15 }
 0x593   : > { %v894_v19 = vmul.f32 %v1260_v52, %v893_v53 }
 0x595   : > { %v895_v7 = vmul.f32 0.5, %v894_v19 }
 0x597   : > { %v896_v17 = vsub.f32 1.5, %v895_v7 }
 0x599   : > { %v897_v20 = vmul.f32 %v1260_v52, %v896_v17 }
 0x59b   : > { %v901_v54 = vsel %vm900_vm2, %v1260_v52, %v897_v20 }
 0x59c   : > { %v909_v11 = vmul.f32 %v901_v54, %v1582_v55 }
 0x59e   : > { %v918_v56 = vmul.f32 %v1632_v57, %v909_v11 }
 0x5a0   : > { %v927_v59 = vadd.f32 %v1644_v30, %v918_v56 }
 0x5a2   : > { %1157 = vmatmul.msk.f32.gmra.mxu3 %vm221_vm0, %v927_v59 }
 0x5f8   : > { %v985_v61 = vpop.f32.mrf.mxu2  ;;  %v997_v0 = vpop.f32.mrf.mxu3 }
 0x5f9   : > { %v1009_v1 = vmax.f32 %v985_v61, 0.0  ;;  %v1013_v2 = vmax.f32 %v997_v0, 0.0 }
 0x5fb   : > { %v1017_v3 = vadd.f32 %v1009_v1, %v1363_v23  ;;  %v1021_v4 = vadd.f32 %v1013_v2, %v1363_v23 }
 0x5fd   : > { %1025 = vst.msk [vmem:[%s207_s6] sm:$0xff] %vm221_vm0, %v1017_v3 }
 0x5fe   : > { %1029 = vst.msk [vmem:[%s207_s6 + $0x20] sm:$0xff] %vm221_vm0, %v1021_v4 }
 0x600   : > { %v988_v55 = vpop.f32.mrf.mxu2  ;;  %v1000_v57 = vpop.f32.mrf.mxu3 }
 0x601   : > { %v1010_v5 = vmax.f32 %v988_v55, 0.0  ;;  %v1014_v6 = vmax.f32 %v1000_v57, 0.0 }
 0x603   : > { %v1018_v8 = vadd.f32 %v1010_v5, %v1367_v24  ;;  %v1022_v10 = vadd.f32 %v1014_v6, %v1367_v24 }
 0x605   : > { %1026 = vst.msk [vmem:[%s207_s6 + $0x8] sm:$0xff] %vm221_vm0, %v1018_v8 }
 0x606   : > { %1030 = vst.msk [vmem:[%s207_s6 + $0x28] sm:$0xff] %vm221_vm0, %v1022_v10 }
 0x608   : > { %v991_v13 = vpop.f32.mrf.mxu2  ;;  %v1003_v30 = vpop.f32.mrf.mxu3 }
 0x609   : > { %v1011_v42 = vmax.f32 %v991_v13, 0.0  ;;  %v1015_v25 = vmax.f32 %v1003_v30, 0.0 }
 0x60b   : > { %v1019_v21 = vadd.f32 %v1011_v42, %v1363_v23  ;;  %v1023_v27 = vadd.f32 %v1015_v25, %v1363_v23 }
 0x60d   : > { %1027 = vst.msk [vmem:[%s207_s6 + $0x10] sm:$0xff] %vm221_vm0, %v1019_v21 }
 0x60e   : > { %1031 = vst.msk [vmem:[%s207_s6 + $0x30] sm:$0xff] %vm221_vm0, %v1023_v27 }
 0x610   : > { %v994_v62 = vpop.f32.mrf.mxu2 }
 0x611   : > { %v1012_v63 = vmax.f32 %v994_v62, 0.0 }
 0x613   : > { %v1020_v33 = vadd.f32 %v1012_v63, %v1367_v24 }
 0x615   : > { %1028 = vst.msk [vmem:[%s207_s6 + $0x18] sm:$0xff] %vm221_vm0, %v1020_v33 }
 0x625   : > { %v1006_v9 = vpop.f32.mrf.mxu3 }
 0x626   : > { %v1016_v29 = vmax.f32 %v1006_v9, 0.0 }
 0x628   : > { %v1024_v34 = vadd.f32 %v1016_v29, %v1367_v24 }
 0x62a   : > { %1032 = vst.msk [vmem:[%s207_s6 + $0x38] sm:$0xff] %vm221_vm0, %v1024_v34 }
 0x62b PF: > { %s13_s12 = sadd.s32 1, %s1267_s12  }
 0x62c   : > { %p10_p4 = scmp.ge.s32.totalorder %s13_s12, 4  }
 0x62e   :  { %12 = sbr.rel (!%p10_p4) target bundleno = 1 (0x1), region = 68 }

</bundles_post_ra>
